<compile_context>
chip_gen: v7x
topology: tpu7x:2x2x1
jax: 0.10.0
libtpu: 0.0.40
codegen_flags: <defaults>
</compile_context>

<pallas_src>
import functools

import jax
import jax.numpy as jnp
from jax import lax
from jax.experimental import pallas as pl
from jax.experimental.pallas import tpu as pltpu

GAMMA = 2        # RougeLoss(gamma=2); static -> dist*dist instead of pow
ALPHA = 0.01     # only used by margin_ranking, not by forward()
EPS = 1e-30

LANE = 128                      # TPU lane width
DEFAULT_BLOCK_BYTES = 1 << 20   # ~1 MiB per input block (~85%+ of HBM roofline)


def _focal_kernel(out_ref, delta_ref, loss_ref,
                  sfl_ref, spfl_ref, sdelta_ref,
                  *, n_true, r_tile, num_k, rows_valid, has_tail):
    k = pl.program_id(1)

    @pl.when(k == 0)
    def _init():
        sfl_ref[...] = jnp.zeros_like(sfl_ref)
        spfl_ref[...] = jnp.zeros_like(spfl_ref)
        sdelta_ref[...] = jnp.zeros_like(sdelta_ref)

    out = out_ref[...].astype(jnp.float32)      # (1, r_tile, LANE)
    delta = delta_ref[...].astype(jnp.float32)  # (1, r_tile, LANE)

    # gamma == 2 -> plain square (VALU only, no EUP pow); |.| dropped (value is squared).
    diff = out - delta
    log_a = jnp.log(out + EPS)                  # log(out + eps)
    log_b = jnp.log(1.0 - out + EPS)            # log(1 - out + eps)
    # torch: fl = (-log(1-d^2+eps)) * (-(delta*logA + (1-delta)*logB)); the two
    # negations cancel, and the inner term is factored (saves a mul + a sub).
    fl = jnp.log(1.0 - diff * diff + EPS) * (delta * (log_a - log_b) + log_b)

    def _accum(fl_v, delta_v):
        # strict > 0.6, as torch.gt; select (not mul) keeps masked-out NaN/Inf from leaking
        pfl_v = jnp.where(delta_v > 0.6, fl_v, 0.0)
        if r_tile % 8 == 0:
            # vreg-shaped accumulation: pure vreg+vreg adds; XLU reduce deferred to finalize
            sfl_ref[...] += fl_v.reshape(-1, 8, LANE).sum(axis=0)
            spfl_ref[...] += pfl_v.reshape(-1, 8, LANE).sum(axis=0)
            sdelta_ref[...] += delta_v.reshape(-1, 8, LANE).sum(axis=0)
        else:
            # tiny single-block fallback (r not a multiple of 8): sublane-reduce here
            sfl_ref[0:1, :] += fl_v.sum(axis=1)
            spfl_ref[0:1, :] += pfl_v.sum(axis=1)
            sdelta_ref[0:1, :] += delta_v.sum(axis=1)

    if has_tail:
        # Only the last grid step overhangs the row axis; its invalid rows hold
        # unspecified data, so mask them.  Full steps take the unmasked path.
        tail_valid = rows_valid - (num_k - 1) * r_tile   # static Python int

        @pl.when(k < num_k - 1)
        def _full_step():
            _accum(fl, delta)

        @pl.when(k == num_k - 1)
        def _tail_step():
            row = lax.broadcasted_iota(jnp.int32, fl.shape, 1)
            m = row < tail_valid
            _accum(jnp.where(m, fl, 0.0), jnp.where(m, delta, 0.0))
    else:
        _accum(fl, delta)

    @pl.when(k == num_k - 1)
    def _finalize():
        sum_fl = jnp.sum(sfl_ref[...])          # single (8,128) reduce per batch
        sum_pfl = jnp.sum(spfl_ref[...])
        sum_d = jnp.sum(sdelta_ref[...])
        fl_p = sum_pfl / sum_d                  # Inf/NaN if no positives (matches torch)
        # sum(mask_n * fl) == sum_fl - sum_pfl ; sum(1 - delta) == N - sum(delta)
        fl_n = (sum_fl - sum_pfl) / (n_true - sum_d)
        loss_ref[...] = jnp.full(loss_ref.shape, fl_p + fl_n, dtype=jnp.float32)


def rouge_focal_loss(out_matrix, delta_rouge, *, max_block_bytes=DEFAULT_BLOCK_BYTES):
    """Pallas implementation of RougeLoss.forward (the focal branch)."""
    b = out_matrix.shape[0]
    out_flat = out_matrix.reshape(b, -1)
    delta_flat = delta_rouge.reshape(b, -1)
    n = out_flat.shape[1]                       # true N (negative denominator)

    # Lane packing: pad only if n % 128 != 0, and only up to the next multiple of 128.
    # Padded zeros contribute exactly 0 to every accumulated sum (EPS=1e-30 invariant).
    n_pad = pl.cdiv(n, LANE) * LANE
    if n_pad != n:
        pad = ((0, 0), (0, n_pad - n))
        out_flat = jnp.pad(out_flat, pad)
        delta_flat = jnp.pad(delta_flat, pad)
    r = n_pad // LANE
    out3 = out_flat.reshape(b, r, LANE)         # pure reshape on the fast path (no copy)
    delta3 = delta_flat.reshape(b, r, LANE)

    # Row-tile size from a VMEM block-byte budget (B is on the grid, not in the block).
    it_max = max(out3.dtype.itemsize, delta3.dtype.itemsize)
    it_min = min(out3.dtype.itemsize, delta3.dtype.itemsize)
    sub = {4: 8, 2: 16, 1: 32}.get(it_min, 8)   # sublane multiple for packed dtypes
    budget = max(sub, (max_block_bytes // (LANE * it_max)) // sub * sub)
    if r <= budget:
        r_tile, num_k, has_tail = r, 1, False   # single block: may be ragged, no mask needed
    else:
        r_tile = budget                         # multiple of 8 (16 for bf16)
        num_k = pl.cdiv(r, r_tile)
        has_tail = (r % r_tile) != 0

    kernel = functools.partial(
        _focal_kernel, n_true=float(n), r_tile=r_tile, num_k=num_k,
        rows_valid=r, has_tail=has_tail)

    per_batch = pl.pallas_call(
        kernel,
        out_shape=jax.ShapeDtypeStruct((b, 8, LANE), jnp.float32),
        grid_spec=pltpu.PrefetchScalarGridSpec(
            num_scalar_prefetch=0,
            grid=(b, num_k),
            in_specs=[
                pl.BlockSpec((1, r_tile, LANE), lambda bi, k: (bi, k, 0)),
                pl.BlockSpec((1, r_tile, LANE), lambda bi, k: (bi, k, 0)),
            ],
            # lane-dense per-batch loss block; resident across the reduction axis
            out_specs=pl.BlockSpec((1, 8, LANE), lambda bi, k: (bi, 0, 0)),
            scratch_shapes=[
                pltpu.VMEM((8, LANE), jnp.float32),   # sum(fl) vreg-partials
                pltpu.VMEM((8, LANE), jnp.float32),   # sum(mask_p * fl) vreg-partials
                pltpu.VMEM((8, LANE), jnp.float32),   # sum(delta) vreg-partials
            ],
        ),
        compiler_params=pltpu.CompilerParams(
            dimension_semantics=("parallel", "arbitrary"),  # batch across cores, k reduce
            vmem_limit_bytes=32 * 1024 * 1024,
        ),
    )(out3, delta3)
    return jnp.mean(per_batch[:, 0, 0])


def _focal_reference(out_matrix, delta_rouge):
    """Pure-JAX reference mirroring the PyTorch focal() for sanity checking."""
    b = out_matrix.shape[0]
    out = out_matrix.reshape(b, -1).astype(jnp.float32)
    delta = delta_rouge.reshape(b, -1).astype(jnp.float32)
    dist = jnp.abs(out - delta)
    fl_w = -jnp.log(1.0 - jnp.square(dist) + EPS)       # torch.pow(dist, 2)
    nll_p = -delta * jnp.log(out + EPS)
    nll_n = -(1.0 - delta) * jnp.log(1.0 - out + EPS)
    fl = fl_w * (nll_p + nll_n)
    mask_p = (delta > 0.6).astype(jnp.float32)
    mask_n = 1.0 - mask_p
    fl_p = jnp.sum(mask_p * fl, axis=-1) / jnp.sum(delta, axis=-1)
    fl_n = jnp.sum(mask_n * fl, axis=-1) / jnp.sum(1.0 - delta, axis=-1)
    return jnp.mean(fl_p + fl_n)


if __name__ == "__main__":
    key = jax.random.PRNGKey(0)
    k1, k2, k3, k4 = jax.random.split(key, 4)

    # Case 1: small, lane-aligned shape (n % 128 == 0) -> pad-free single-block path.
    B, S = 2, 16
    out_matrix = jax.nn.sigmoid(jax.random.normal(k1, (B, S, S), dtype=jnp.float32))
    delta_rouge = jax.random.uniform(k2, (B, S, S), dtype=jnp.float32)
    loss = jax.block_until_ready(rouge_focal_loss(out_matrix, delta_rouge))
    ref = _focal_reference(out_matrix, delta_rouge)
    assert jnp.allclose(loss, ref, rtol=1e-4, atol=1e-4), (loss, ref)

    # Case 2: ragged n (35*35 = 1225) with a tiny forced block budget -> exercises lane
    # padding, the multi-step reduction grid, and the masked overhanging tail block.
    S2 = 35
    out2 = jax.nn.sigmoid(jax.random.normal(k3, (B, S2, S2), dtype=jnp.float32))
    delta2 = jax.random.uniform(k4, (B, S2, S2), dtype=jnp.float32)
    loss2 = jax.block_until_ready(rouge_focal_loss(out2, delta2, max_block_bytes=4096))
    ref2 = _focal_reference(out2, delta2)
    assert jnp.allclose(loss2, ref2, rtol=1e-4, atol=1e-4), (loss2, ref2)

    print("KERNEL_OK")
</pallas_src>

<mosaic_0001>
module attributes {stable_mosaic.version = 11 : i64} {
  func.func @_focal_kernel(%arg0: i32, %arg1: i32, %arg2: memref<1x2x128xf32, #tpu.memory_space<vmem>>, %arg3: memref<1x2x128xf32, #tpu.memory_space<vmem>>, %arg4: memref<1x8x128xf32, #tpu.memory_space<vmem>>, %arg5: memref<8x128xf32, #tpu.memory_space<vmem>>, %arg6: memref<8x128xf32, #tpu.memory_space<vmem>>, %arg7: memref<8x128xf32, #tpu.memory_space<vmem>>) attributes {dimension_semantics = [#tpu.dimension_semantics<parallel>, #tpu.dimension_semantics<arbitrary>], iteration_bounds = array<i64: 2, 1>, scalar_prefetch = 0 : i64, scratch_operands = 3 : i64, tpu.core_type = #tpu.core_type<tc>, window_params = [{transform_indices = @transform_0, window_bounds = array<i64: 1, 2, 128>}, {transform_indices = @transform_1, window_bounds = array<i64: 1, 2, 128>}, {transform_indices = @transform_2, window_bounds = array<i64: 1, 8, 128>}]} {
    %c0_i32 = arith.constant 0 : i32
    %0 = arith.cmpi eq, %arg1, %c0_i32 : i32
    %1 = arith.extui %0 : i1 to i32
    %c0_i32_0 = arith.constant 0 : i32
    %2 = arith.cmpi ne, %1, %c0_i32_0 : i32
    scf.if %2 {
      %cst_29 = arith.constant 0.000000e+00 : f32
      %43 = vector.broadcast %cst_29 : f32 to vector<8x128xf32>
      %c0_30 = arith.constant 0 : index
      %c0_31 = arith.constant 0 : index
      %44 = vector.load %arg5[%c0_30, %c0_31] : memref<8x128xf32, #tpu.memory_space<vmem>>, vector<8x128xf32>
      tpu.vector_store %arg5[%c0_30, %c0_31], %43 {strides = array<i32>} : memref<8x128xf32, #tpu.memory_space<vmem>>, vector<8x128xf32>,
      %cst_32 = arith.constant 0.000000e+00 : f32
      %45 = vector.broadcast %cst_32 : f32 to vector<8x128xf32>
      %c0_33 = arith.constant 0 : index
      %c0_34 = arith.constant 0 : index
      %46 = vector.load %arg6[%c0_33, %c0_34] : memref<8x128xf32, #tpu.memory_space<vmem>>, vector<8x128xf32>
      tpu.vector_store %arg6[%c0_33, %c0_34], %45 {strides = array<i32>} : memref<8x128xf32, #tpu.memory_space<vmem>>, vector<8x128xf32>,
      %cst_35 = arith.constant 0.000000e+00 : f32
      %47 = vector.broadcast %cst_35 : f32 to vector<8x128xf32>
      %c0_36 = arith.constant 0 : index
      %c0_37 = arith.constant 0 : index
      %48 = vector.load %arg7[%c0_36, %c0_37] : memref<8x128xf32, #tpu.memory_space<vmem>>, vector<8x128xf32>
      tpu.vector_store %arg7[%c0_36, %c0_37], %47 {strides = array<i32>} : memref<8x128xf32, #tpu.memory_space<vmem>>, vector<8x128xf32>,
    } else {
    }
    %c0 = arith.constant 0 : index
    %c0_1 = arith.constant 0 : index
    %c0_2 = arith.constant 0 : index
    %3 = vector.load %arg2[%c0, %c0_1, %c0_2] : memref<1x2x128xf32, #tpu.memory_space<vmem>>, vector<1x2x128xf32>
    %c0_3 = arith.constant 0 : index
    %c0_4 = arith.constant 0 : index
    %c0_5 = arith.constant 0 : index
    %4 = vector.load %arg3[%c0_3, %c0_4, %c0_5] : memref<1x2x128xf32, #tpu.memory_space<vmem>>, vector<1x2x128xf32>
    %5 = arith.subf %3, %4 : vector<1x2x128xf32>
    %cst = arith.constant 1.000000e-30 : f32
    %6 = vector.broadcast %cst : f32 to vector<1x2x128xf32>
    %7 = arith.addf %3, %6 : vector<1x2x128xf32>
    %8 = math.log %7 : vector<1x2x128xf32>
    %cst_6 = arith.constant 1.000000e+00 : f32
    %9 = vector.broadcast %cst_6 : f32 to vector<1x2x128xf32>
    %10 = arith.subf %9, %3 : vector<1x2x128xf32>
    %cst_7 = arith.constant 1.000000e-30 : f32
    %11 = vector.broadcast %cst_7 : f32 to vector<1x2x128xf32>
    %12 = arith.addf %10, %11 : vector<1x2x128xf32>
    %13 = math.log %12 : vector<1x2x128xf32>
    %14 = arith.mulf %5, %5 : vector<1x2x128xf32>
    %cst_8 = arith.constant 1.000000e+00 : f32
    %15 = vector.broadcast %cst_8 : f32 to vector<1x2x128xf32>
    %16 = arith.subf %15, %14 : vector<1x2x128xf32>
    %cst_9 = arith.constant 1.000000e-30 : f32
    %17 = vector.broadcast %cst_9 : f32 to vector<1x2x128xf32>
    %18 = arith.addf %16, %17 : vector<1x2x128xf32>
    %19 = math.log %18 : vector<1x2x128xf32>
    %20 = arith.subf %8, %13 : vector<1x2x128xf32>
    %21 = arith.mulf %4, %20 : vector<1x2x128xf32>
    %22 = arith.addf %21, %13 : vector<1x2x128xf32>
    %23 = arith.mulf %19, %22 : vector<1x2x128xf32>
    %cst_10 = arith.constant 6.000000e-01 : f32
    %24 = vector.broadcast %cst_10 : f32 to vector<1x2x128xf32>
    %25 = arith.cmpf ogt, %4, %24 : vector<1x2x128xf32>
    %cst_11 = arith.constant 0.000000e+00 : f32
    %26 = vector.broadcast %cst_11 : f32 to vector<1x2x128xf32>
    %27 = arith.select %25, %23, %26 : vector<1x2x128xi1>, vector<1x2x128xf32>
    %c0_12 = arith.constant 0 : index
    %c0_13 = arith.constant 0 : index
    %28 = vector.load %arg5[%c0_12, %c0_13] : memref<8x128xf32, #tpu.memory_space<vmem>>, vector<1x128xf32>
    %cst_14 = arith.constant dense<0.000000e+00> : vector<1x128xf32>
    %29 = vector.multi_reduction <add>, %23, %cst_14 [1] : vector<1x2x128xf32> to vector<1x128xf32>
    %30 = arith.addf %28, %29 : vector<1x128xf32>
    %c0_15 = arith.constant 0 : index
    %c0_16 = arith.constant 0 : index
    %31 = vector.load %arg5[%c0_15, %c0_16] : memref<8x128xf32, #tpu.memory_space<vmem>>, vector<1x128xf32>
    tpu.vector_store %arg5[%c0_15, %c0_16], %30 {strides = array<i32>} : memref<8x128xf32, #tpu.memory_space<vmem>>, vector<1x128xf32>,
    %c0_17 = arith.constant 0 : index
    %c0_18 = arith.constant 0 : index
    %32 = vector.load %arg6[%c0_17, %c0_18] : memref<8x128xf32, #tpu.memory_space<vmem>>, vector<1x128xf32>
    %cst_19 = arith.constant dense<0.000000e+00> : vector<1x128xf32>
    %33 = vector.multi_reduction <add>, %27, %cst_19 [1] : vector<1x2x128xf32> to vector<1x128xf32>
    %34 = arith.addf %32, %33 : vector<1x128xf32>
    %c0_20 = arith.constant 0 : index
    %c0_21 = arith.constant 0 : index
    %35 = vector.load %arg6[%c0_20, %c0_21] : memref<8x128xf32, #tpu.memory_space<vmem>>, vector<1x128xf32>
    tpu.vector_store %arg6[%c0_20, %c0_21], %34 {strides = array<i32>} : memref<8x128xf32, #tpu.memory_space<vmem>>, vector<1x128xf32>,
    %c0_22 = arith.constant 0 : index
    %c0_23 = arith.constant 0 : index
    %36 = vector.load %arg7[%c0_22, %c0_23] : memref<8x128xf32, #tpu.memory_space<vmem>>, vector<1x128xf32>
    %cst_24 = arith.constant dense<0.000000e+00> : vector<1x128xf32>
    %37 = vector.multi_reduction <add>, %4, %cst_24 [1] : vector<1x2x128xf32> to vector<1x128xf32>
    %38 = arith.addf %36, %37 : vector<1x128xf32>
    %c0_25 = arith.constant 0 : index
    %c0_26 = arith.constant 0 : index
    %39 = vector.load %arg7[%c0_25, %c0_26] : memref<8x128xf32, #tpu.memory_space<vmem>>, vector<1x128xf32>
    tpu.vector_store %arg7[%c0_25, %c0_26], %38 {strides = array<i32>} : memref<8x128xf32, #tpu.memory_space<vmem>>, vector<1x128xf32>,
    %c0_i32_27 = arith.constant 0 : i32
    %40 = arith.cmpi eq, %arg1, %c0_i32_27 : i32
    %41 = arith.extui %40 : i1 to i32
    %c0_i32_28 = arith.constant 0 : i32
    %42 = arith.cmpi ne, %41, %c0_i32_28 : i32
    scf.if %42 {
      %c0_29 = arith.constant 0 : index
      %c0_30 = arith.constant 0 : index
      %43 = vector.load %arg5[%c0_29, %c0_30] : memref<8x128xf32, #tpu.memory_space<vmem>>, vector<8x128xf32>
      %44 = vector.shape_cast %43 : vector<8x128xf32> to vector<1x8x128xf32>
      %cst_31 = arith.constant dense<0.000000e+00> : vector<1xf32>
      %45 = vector.multi_reduction <add>, %44, %cst_31 [1, 2] : vector<1x8x128xf32> to vector<1xf32>
      %46 = vector.shape_cast %45 : vector<1xf32> to vector<1x1x1xf32>
      %47 = vector.extract %46[0, 0, 0] : f32 from vector<1x1x1xf32>
      %c0_32 = arith.constant 0 : index
      %c0_33 = arith.constant 0 : index
      %48 = vector.load %arg6[%c0_32, %c0_33] : memref<8x128xf32, #tpu.memory_space<vmem>>, vector<8x128xf32>
      %49 = vector.shape_cast %48 : vector<8x128xf32> to vector<1x8x128xf32>
      %cst_34 = arith.constant dense<0.000000e+00> : vector<1xf32>
      %50 = vector.multi_reduction <add>, %49, %cst_34 [1, 2] : vector<1x8x128xf32> to vector<1xf32>
      %51 = vector.shape_cast %50 : vector<1xf32> to vector<1x1x1xf32>
      %52 = vector.extract %51[0, 0, 0] : f32 from vector<1x1x1xf32>
      %c0_35 = arith.constant 0 : index
      %c0_36 = arith.constant 0 : index
      %53 = vector.load %arg7[%c0_35, %c0_36] : memref<8x128xf32, #tpu.memory_space<vmem>>, vector<8x128xf32>
      %54 = vector.shape_cast %53 : vector<8x128xf32> to vector<1x8x128xf32>
      %cst_37 = arith.constant dense<0.000000e+00> : vector<1xf32>
      %55 = vector.multi_reduction <add>, %54, %cst_37 [1, 2] : vector<1x8x128xf32> to vector<1xf32>
      %56 = vector.shape_cast %55 : vector<1xf32> to vector<1x1x1xf32>
      %57 = vector.extract %56[0, 0, 0] : f32 from vector<1x1x1xf32>
      %58 = arith.divf %52, %57 : f32
      %59 = arith.subf %47, %52 : f32
      %cst_38 = arith.constant 2.560000e+02 : f32
      %60 = arith.subf %cst_38, %57 : f32
      %61 = arith.divf %59, %60 : f32
      %62 = arith.addf %58, %61 : f32
      %63 = vector.broadcast %62 : f32 to vector<1x8x128xf32>
      %c0_39 = arith.constant 0 : index
      %c0_40 = arith.constant 0 : index
      %c0_41 = arith.constant 0 : index
      %64 = vector.load %arg4[%c0_39, %c0_40, %c0_41] : memref<1x8x128xf32, #tpu.memory_space<vmem>>, vector<1x8x128xf32>
      tpu.vector_store %arg4[%c0_39, %c0_40, %c0_41], %63 {strides = array<i32>} : memref<1x8x128xf32, #tpu.memory_space<vmem>>, vector<1x8x128xf32>,
    } else {
    }
    return
  }
  func.func @transform_0(%arg0: i32, %arg1: i32) -> (i32, i32, i32) {
    %c0_i32 = arith.constant 0 : i32
    %c0_i32_0 = arith.constant 0 : i32
    return %arg0, %arg1, %c0_i32 : i32, i32, i32
  }
  func.func @transform_1(%arg0: i32, %arg1: i32) -> (i32, i32, i32) {
    %c0_i32 = arith.constant 0 : i32
    %c0_i32_0 = arith.constant 0 : i32
    return %arg0, %arg1, %c0_i32 : i32, i32, i32
  }
  func.func @transform_2(%arg0: i32, %arg1: i32) -> (i32, i32, i32) {
    %c0_i32 = arith.constant 0 : i32
    %c0_i32_0 = arith.constant 0 : i32
    %c0_i32_1 = arith.constant 0 : i32
    return %arg0, %c0_i32, %c0_i32_0 : i32, i32, i32
  }
}

</mosaic_0001>

<bundles_post_ra>
// kernel: tpu_custom_call.1
= control target key start
LH: loop header
LB: loop body
LE: loop exit
PB: predicated region body
PF: predicated region fallthrough
CT: control target
= control target key end

     0   :  { %7 = vsyncpa [#allocation6], 0  ;;  %s931_s0 = inlined_call_operand.hbm [shape: f32[2,2,128], index: 0, kind: input, shape index: {}]   ;;  %s932_s1 = inlined_call_operand.hbm [shape: f32[2,2,128], index: 1, kind: input, shape index: {}]   ;;  %s933_s2 = inlined_call_operand.hbm [shape: f32[2,8,128], index: 2, kind: output, shape index: {}]  }
   0x1   :  { %9 = vsyncpa [#allocation6 + $0x1], 0 }
   0x2   :  { %10 = vsyncpa [#allocation9], 0 }
   0x3   :  { %12 = vsyncpa [#allocation9 + $0x1], 0 }
   0x4   :  { %13 = vsyncpa [#allocation7], 0 }
   0x5   :  { %15 = vsyncpa [#allocation7 + $0x1], 0  ;;  %s707_s9 = smov 0   ;;  %s709_s10 = smov 0  }
   0x6   :  { %s711_s11 = smov 0   ;;  %s713_s12 = smov 0  }
   0x7   :  { %s715_s13 = smov 0   ;;  %s717_s14 = smov 0  }
   0x8 LB: > { %s436_s15 = sadd.s32 4294967295, %s686_s14   ;;  %s437_s16 = sadd.s32 4294967294, %s686_s14   ;;  %s686_s14 = sphi %s717_s14, %s21_s14   ;;  %s682_s13 = sphi %s715_s13, %s953_s13   ;;  %s678_s12 = sphi %s713_s12, %s952_s12   ;;  %s674_s11 = sphi %s711_s11, %s951_s11   ;;  %s670_s10 = sphi %s709_s10, %s950_s10   ;;  %s666_s9 = sphi %s707_s9, %s949_s9  }
   0x9   : > { %s33_s17 = sadd.s32 1, %s682_s13  ;;  %s42_s18 = sadd.s32 1, %s674_s11 }
   0xa   : > { %p35_p0 = scmp.ge.s32.totalorder %s33_s17, 2  ;;  %p49_p1 = scmp.ne.s32.totalorder %s674_s11, %s670_s10 }
   0xb   : > { %p50_p2 = scmp.eq.s32.totalorder %s686_s14, 0  ;;  %p55_p3 = scmp.ne.s32.totalorder %s670_s10, %s666_s9 }
   0xc   : > { %s955_s17 = smov (%p35_p0, %s33_s17), 0  ;;  %p56_p5 = scmp.eq.s32.totalorder %s436_s15, 0 }
   0xd   : > { %p748_p4 = por %p50_p2, %p49_p1  ;;  %s37_s20 = ssub.s32 %s682_s13, %s955_s17 }
   0xe   : > { %p107_p6 = scmp.eq.s32.totalorder %s436_s15, 1  ;;  %p40_p7 = scmp.eq.s32.totalorder %s37_s20, 0 }
   0xf   : > { %p754_p8 = por %p56_p5, %p55_p3  ;;  %p113_p10 = scmp.eq.s32.totalorder %s437_s16, 1 }
  0x10   : > { %p758_p9 = por %p107_p6, %p49_p1  ;;  %p479_p13 = scmp.lt.s32.totalorder %s686_s14, 2 }
  0x11   : > { %s937_s21 = scalar_select %p754_p8, 1, 0 }
  0x12   : > { %s938_s22 = scalar_select %p758_p9, 1, 0 }
  0x13   : > { %s763_s23 = scalar_select %p40_p7, %s674_s11, %s42_s18  }
  0x14   : > { %p765_p11 = por %p113_p10, %p55_p3  ;;  %s772_s25 = sand.u32 1, %s674_s11  }
  0x15   : > { %s440_s26 = sshll.u32 %s772_s25, 1  ;;  %s441_s27 = sshll.u32 %s682_s13, 5 }
  0x16   : > { %s939_s24 = scalar_select %p765_p11, 1, 0 }
  0x17   : > { %s781_s30 = scalar_lea.hbm %s931_s0, %s441_s27  ;;  %s137_s3 = scalar_lea.vmem [#allocation5], %s440_s26 }
  0x18   : > { %s145_s4 = sshll.u32 %s137_s3, 4  ;;  %p789_p0 = pnand %p479_p13, %p748_p4  ;;  %s785_s4 = int_to_ptr.vmem [resolvable:$true] %s145_s4 }
  0x19   : > { %s134_s6 = scalar_lea.sflag [#allocation6], %s772_s25  ;;  %s540_s7 = scalar_lea.hbm %s781_s30, 32 }
  0x1a   : > { %p541_p3 = scmp.ne.s32.totalorder %s781_s30, %s540_s7  ;;  %p542_p5 = pneg %p789_p0 }
  0x1b   : > { %s545_s16 = scalar_lea.hbm %s931_s0, 64  ;;  %p546_p4 = scmp.lt.u32.totalorder %s781_s30, %s931_s0 }
  0x1c   : > { %p543_p6 = pnand %p542_p5, %p541_p3  ;;  %p547_p10 = scmp.lt.u32.totalorder %s545_s16, %s540_s7 }
  0x1d   : > { %p549_p12 = scmp.lt.u32.totalorder %s540_s7, %s781_s30 }
  0x1e   : > { %p544_p7 = pneg %p543_p6  ;;  %p548_p13 = por %p547_p10, %p546_p4 }
  0x20   : > { %p550_p1 = por %p549_p12, %p548_p13 }
  0x22   : > { %p551_p2 = pnand %p550_p1, %p544_p7 }
  0x24   : > { %554 = shalt.err (!%p551_p2)
}
  0x25   : > { %s555_s20 = scalar_lea.vmem %s785_s4, 32  ;;  %s688_s28 = smov [#allocation5]  }
  0x26   : > { %p556_p3 = scmp.ne.s32.totalorder %s785_s4, %s555_s20  ;;  %s560_s29 = sshll.u32 %s688_s28, 4  ;;  %s561_s29 = int_to_ptr.vmem [resolvable:$false] %s560_s29 }
  0x27   : > { %s562_s3 = scalar_lea.vmem %s561_s29, 64  ;;  %p563_p9 = scmp.lt.s32.totalorder %s785_s4, %s561_s29 }
  0x28   : > { %p558_p6 = pnand %p556_p3, %p542_p5  ;;  %p564_p4 = scmp.lt.s32.totalorder %s562_s3, %s555_s20 }
  0x2a   : > { %p559_p11 = pneg %p558_p6  ;;  %p565_p10 = por %p564_p4, %p563_p9 }
  0x2c   : > { %p566_p12 = pnand %p565_p10, %p559_p11 }
  0x2e   : > { %569 = shalt.err (!%p566_p12)
}
  0x2f   : > { %471 = dma.hbm_to_vmem [thread:$0]  (!%p789_p0), %s781_s30, 32, %s785_s4, %s134_s6  }
  0x30   : > { %p941_p1 = scmp.lt.s32.totalorder %s686_s14, 3  ;;  %p942_p2 = scmp.ge.s32.totalorder %s686_s14, 1 }
  0x31   : > { %s834_s16 = scalar_lea.hbm %s932_s1, %s441_s27  ;;  %s156_s18 = scalar_lea.vmem [#allocation8], %s440_s26 }
  0x32   : > { %p825_p7 = pnand %p942_p2, %p941_p1  ;;  %s164_s19 = sshll.u32 %s156_s18, 4  ;;  %s165_s19 = int_to_ptr.vmem [resolvable:$true] %s164_s19 }
  0x33   : > { %s153_s30 = scalar_lea.sflag [#allocation9], %s772_s25  ;;  %s570_s4 = scalar_lea.hbm %s834_s16, 32 }
  0x34   : > { %s943_s7 = scalar_select %p825_p7, 1, 0 }
  0x35   : > { %p571_p9 = scmp.ne.s32.totalorder %s834_s16, %s570_s4  ;;  %s575_s27 = scalar_lea.hbm %s932_s1, 64 }
  0x36   : > { %p576_p3 = scmp.lt.u32.totalorder %s834_s16, %s932_s1  ;;  %p577_p6 = scmp.lt.u32.totalorder %s575_s27, %s570_s4 }
  0x37   : > { %p573_p11 = pnand %p571_p9, %p542_p5  ;;  %p579_p10 = scmp.lt.u32.totalorder %s570_s4, %s834_s16 }
  0x38   : > { %p578_p4 = por %p577_p6, %p576_p3 }
  0x39   : > { %p574_p13 = pneg %p573_p11 }
  0x3a   : > { %p580_p12 = por %p579_p10, %p578_p4 }
  0x3c   : > { %p581_p1 = pnand %p580_p12, %p574_p13 }
  0x3e   : > { %584 = shalt.err (!%p581_p1)
}
  0x3f   : > { %s585_s25 = scalar_lea.vmem %s165_s19, 32  ;;  %s689_s26 = smov [#allocation8]  }
  0x40   : > { %p586_p2 = scmp.ne.s32.totalorder %s165_s19, %s585_s25  ;;  %s590_s3 = sshll.u32 %s689_s26, 4  ;;  %s591_s3 = int_to_ptr.vmem [resolvable:$false] %s590_s3 }
  0x41   : > { %s592_s8 = scalar_lea.vmem %s591_s3, 64  ;;  %p593_p8 = scmp.lt.s32.totalorder %s165_s19, %s591_s3 }
  0x42   : > { %p588_p9 = pnand %p586_p2, %p542_p5  ;;  %p594_p7 = scmp.lt.s32.totalorder %s592_s8, %s585_s25 }
  0x44   : > { %p589_p11 = pneg %p588_p9  ;;  %p595_p3 = por %p594_p7, %p593_p8 }
  0x46   : > { %p596_p6 = pnand %p595_p3, %p589_p11 }
  0x48   : > { %599 = shalt.err (!%p596_p6)
}
  0x49   : > { %474 = dma.hbm_to_vmem [thread:$0]  (!%p789_p0), %s834_s16, 32, %s165_s19, %s153_s30  }
  0x4a   : > { %p944_p13 = scmp.ne.s32.totalorder %s943_s7, 0 }
  0x4b   : > { %s861_s15 = sand.u32 (!%p944_p13), 1, %s670_s10   ;;  %p945_p5 = scmp.ne.s32.totalorder (!%p944_p13), %s937_s21, 0 }
  0x4c   : > { %173 = sbr.rel (%p944_p13) target bundleno = 429 (0x1ad), region = 28  ;;  %s445_s18 = sshll.u32 (!%p944_p13), %s861_s15, 1 }
  0x4d   : > { %s176_s4 = scalar_lea.sflag (!%p944_p13), [#allocation6], %s861_s15  ;;  %s179_s6 = scalar_lea.vmem (!%p944_p13), [#allocation5], %s445_s18 }
  0x53   : > { %653 = dma.done.wait (%p945_p5), %s176_s4, 32  }
  0x54   : > { %655 = vsyncadd (%p945_p5), %s176_s4, 4294967264  ;;  %s185_s5 = scalar_lea.sflag [#allocation9], %s861_s15  ;;  %s188_s16 = scalar_lea.vmem [#allocation8], %s445_s18 }
  0x55   : > { %657 = dma.done.wait (%p945_p5), %s185_s5, 32  }
  0x56   : > { %659 = vsyncadd (%p945_p5), %s185_s5, 4294967264  ;;  %v690_v0 = vmov 0.0   ;;  %vm243_vm0 = vcmask 1041408   ;;  %v221_v1 = vld [vmem:[%s179_s6] sm:$0x3]  ;;  %s447_s20 = sshll.u32 %s861_s15, 3 }
  0x57   : > { %220 = vst [vmem:[#allocation4] sm:$0xff] %v690_v0  ;;  %218 = vst [vmem:[#allocation2] sm:$0xff] %v690_v0  ;;  %v222_v2 = vld [vmem:[%s188_s16] sm:$0x3]  ;;  %v224_v4 = vadd.f32 1e-30, %v221_v1 }
  0x58   : > { %219 = vst [vmem:[#allocation3] sm:$0xff] %v690_v0  ;;  %v223_v3 = vsub.f32 %v221_v1, %v222_v2  ;;  %v264_v5 = vsel %vm243_vm0, %v222_v2, 0.0  ;;  %v227_v6 = vsub.f32 1.0, %v221_v1  ;;  %vm240_vm1 = vcmp.gt.f32.partialorder %v222_v2, 0.6  ;;  %s449_s29 = sshll.u32 %s678_s12, 7 }
  0x59   : > { %v265_v7 = vrot.slane %v264_v5, 4  ;;  %530 = vlog2.f32 %v224_v4  ;;  %s213_s8 = scalar_lea.vmem [#allocation10], %s447_s20  ;;  %s882_s16 = scalar_lea.hbm %s933_s2, %s449_s29 }
  0x5a   : > { %v228_v8 = vadd.f32 1e-30, %v227_v6  ;;  %v231_v9 = vmul.f32 %v223_v3, %v223_v3  ;;  %s333_s18 = sshll.u32 %s213_s8, 4  ;;  %p946_p0 = scmp.ne.s32.totalorder %s938_s22, 0  ;;  %s884_s18 = int_to_ptr.vmem [resolvable:$true] %s333_s18 }
  0x5b   : > { %v266_v10 = vadd.f32 %v265_v7, %v264_v5  ;;  %s600_s12 = scalar_lea.vmem %s884_s18, 128 }
  0x5c   : > { %532 = vlog2.f32 %v228_v8  ;;  %v232_v11 = vsub.f32 1.0, %v231_v9  ;;  %p601_p8 = scmp.ne.s32.totalorder %s884_s18, %s600_s12 }
  0x5d   : > { %v267_v12 = vrot.slane %v266_v10, 2 }
  0x5e   : > { %v233_v13 = vadd.f32 1e-30, %v232_v11  ;;  %v263_v16 = vld [vmem:[#allocation4] sm:$0x1]  ;;  %v242_v42 = vld [vmem:[#allocation2] sm:$0x1]  ;;  %p602_p7 = pnand %p601_p8, %p946_p0 }
  0x5f   : > { %v268_v14 = vadd.f32 %v267_v12, %v266_v10  ;;  %v253_v45 = vld [vmem:[#allocation3] sm:$0x1] }
  0x60   : > { %534 = vlog2.f32 %v233_v13  ;;  %p603_p4 = pneg %p602_p7 }
  0x61   : > { %v269_v15 = vrot.slane %v268_v14, 1 }
  0x63   : > { %v270_v17 = vadd.f32 %v269_v15, %v268_v14  ;;  %v531_v18 = vpop.eup %530 }
  0x64   : > { %v226_v20 = vmul.f32 0.6931472, %v531_v18 }
  0x65   : > { %v271_v19 = vadd.f32 %v270_v17, %v263_v16 }
  0x66   : > { %v533_v21 = vpop.eup %532 }
  0x67   : > { %272 = vst [vmem:[#allocation4] sm:$0x1] %v271_v19  ;;  %v230_v22 = vmul.f32 0.6931472, %v533_v21 }
  0x69   : > { %v236_v23 = vsub.f32 %v226_v20, %v230_v22 }
  0x6a   : > { %v535_v24 = vpop.eup %534 }
  0x6b   : > { %v235_v25 = vmul.f32 0.6931472, %v535_v24  ;;  %v237_v26 = vmul.f32 %v236_v23, %v222_v2 }
  0x6d   : > { %v238_v27 = vadd.f32 %v237_v26, %v230_v22 }
  0x6e   : > { %v296_v28 = vld [vmem:[#allocation4] sm:$0xff] }
  0x6f   : > { %297 = vadd.xlane.f32.xlu1 %v296_v28  ;;  %v239_v29 = vmul.f32 %v238_v27, %v235_v25 }
  0x71   : > { %v244_v30 = vsel %vm243_vm0, %v239_v29, 0.0  ;;  %v241_v31 = vsel %vm240_vm1, %v239_v29, 0.0 }
  0x72   : > { %v245_v32 = vrot.slane %v244_v30, 4  ;;  %v254_v33 = vsel %vm243_vm0, %v241_v31, 0.0 }
  0x73   : > { %v255_v34 = vrot.slane %v254_v33, 4 }
  0x74   : > { %v246_v35 = vadd.f32 %v245_v32, %v244_v30 }
  0x75   : > { %v256_v36 = vadd.f32 %v255_v34, %v254_v33 }
  0x76   : > { %v247_v37 = vrot.slane %v246_v35, 2 }
  0x77   : > { %v257_v38 = vrot.slane %v256_v36, 2 }
  0x78   : > { %v248_v39 = vadd.f32 %v247_v37, %v246_v35 }
  0x79   : > { %v258_v40 = vadd.f32 %v257_v38, %v256_v36 }
  0x7a   : > { %v249_v41 = vrot.slane %v248_v39, 1 }
  0x7b   : > { %v259_v43 = vrot.slane %v258_v40, 1 }
  0x7c   : > { %v250_v44 = vadd.f32 %v249_v41, %v248_v39 }
  0x7d   : > { %v260_v46 = vadd.f32 %v259_v43, %v258_v40 }
  0x7e   : > { %v251_v47 = vadd.f32 %v250_v44, %v242_v42 }
  0x7f   : > { %v261_v48 = vadd.f32 %v260_v46, %v253_v45 }
  0x80   : > { %252 = vst [vmem:[#allocation2] sm:$0x1] %v251_v47 }
  0x81   : > { %262 = vst [vmem:[#allocation3] sm:$0x1] %v261_v48 }
  0x87   : > { %v276_v49 = vld [vmem:[#allocation2] sm:$0xff] }
  0x88   : > { %277 = vadd.xlane.f32.xlu0 %v276_v49  ;;  %v286_v50 = vld [vmem:[#allocation3] sm:$0xff] }
  0x8c   : > { %287 = vadd.xlane.f32.xlu0 %v286_v50 }
  0xfc   : > { %v298_v51 = vpop.xlane.xlu1 %297 }
  0xfd   : > { %v299_v52 = vrot.slane %v298_v51, 4 }
  0xff   : > { %v300_v53 = vadd.f32 %v299_v52, %v298_v51 }
 0x101   : > { %v301_v57 = vrot.slane %v300_v53, 2 }
 0x103   : > { %v302_v63 = vadd.f32 %v301_v57, %v300_v53 }
 0x105   : > { %v303_v4 = vrot.slane %v302_v63, 1 }
 0x107   : > { %v304_v7 = vadd.f32 %v303_v4, %v302_v63 }
 0x115   : > { %v278_v54 = vpop.xlane.xlu0 %277 }
 0x116   : > { %v279_v55 = vrot.slane %v278_v54, 4 }
 0x118   : > { %v280_v56 = vadd.f32 %v279_v55, %v278_v54 }
 0x119   : > { %v288_v58 = vpop.xlane.xlu0 %287 }
 0x11a   : > { %v281_v59 = vrot.slane %v280_v56, 2  ;;  %v289_v60 = vrot.slane %v288_v58, 4 }
 0x11c   : > { %v290_v61 = vadd.f32 %v289_v60, %v288_v58  ;;  %v282_v62 = vadd.f32 %v281_v59, %v280_v56 }
 0x11e   : > { %v291_v0 = vrot.slane %v290_v61, 2  ;;  %v283_v1 = vrot.slane %v282_v62, 1 }
 0x120   : > { %v292_v2 = vadd.f32 %v291_v0, %v290_v61  ;;  %v284_v3 = vadd.f32 %v283_v1, %v282_v62 }
 0x122   : > { %452 = vpush %v284_v3  ;;  %v293_v5 = vrot.slane %v292_v2, 1 }
 0x124   : > { %v294_v6 = vadd.f32 %v293_v5, %v292_v2 }
 0x126   : > { %454 = vpush %v294_v6 }
 0x127   : > { %456 = vpush %v304_v7 }
 0x153   : > { %s453_s21 = spop %452 }
 0x157   : > { %s455_s7 = spop %454 }
 0x158   : > { %s457_s19 = spop %456  ;;  %s310_s28 = ssub.f32 %s453_s21, %s455_s7 }
 0x159   : > { %v306_v8 = vstv %s457_s19  ;;  %s311_s30 = ssub.f32 256.0, %s457_s19  ;;  %s320_s21 = scalar_lea.sflag [#allocation7], %s861_s15 }
 0x15a   : > { %536 = vrcp.f32 %v306_v8 }
 0x15b   : > { %v312_v9 = vstv %s311_s30 }
 0x15c   : > { %538 = vrcp.f32 %v312_v9 }
 0x164   : > { %v537_v10 = vpop.eup %536 }
 0x165   : > { %458 = vpush %v537_v10 }
 0x166   : > { %v539_v11 = vpop.eup %538 }
 0x167   : > { %460 = vpush %v539_v11 }
 0x196   : > { %s459_s27 = spop %458 }
 0x197   : > { %s309_s25 = smul.f32 %s459_s27, %s455_s7  ;;  %s691_s7 = smov [#allocation10]  }
 0x198   : > { %s461_s26 = spop %460  ;;  %s604_s19 = sshll.u32 %s691_s7, 4  ;;  %s605_s19 = int_to_ptr.vmem [resolvable:$false] %s604_s19 }
 0x199   : > { %s315_s3 = smul.f32 %s461_s26, %s310_s28  ;;  %s606_s30 = scalar_lea.vmem %s605_s19, 256 }
 0x19a   : > { %p607_p10 = scmp.lt.s32.totalorder %s884_s18, %s605_s19  ;;  %p608_p12 = scmp.lt.s32.totalorder %s606_s30, %s600_s12 }
 0x19b   : > { %s316_s4 = sadd.f32 %s315_s3, %s309_s25 }
 0x19c   : > { %p609_p1 = por %p608_p12, %p607_p10 }
 0x19d   : > { %v317_v12 = vstv %s316_s4 }
 0x19e   : > { %318 = vst [vmem:[%s213_s8] sm:$0xff] %v317_v12  ;;  %p610_p2 = pnand %p609_p1, %p603_p4 }
 0x1a0   : > { %613 = shalt.err (!%p610_p2)
}
 0x1a1   : > { %s614_s15 = scalar_lea.hbm %s882_s16, 128  ;;  %s618_s28 = scalar_lea.hbm %s933_s2, 256 }
 0x1a2   : > { %p615_p9 = scmp.ne.s32.totalorder %s882_s16, %s614_s15  ;;  %p619_p6 = scmp.lt.u32.totalorder %s882_s16, %s933_s2 }
 0x1a3   : > { %p620_p13 = scmp.lt.u32.totalorder %s618_s28, %s614_s15  ;;  %p622_p8 = scmp.lt.u32.totalorder %s614_s15, %s882_s16 }
 0x1a4   : > { %p616_p11 = pnand %p615_p9, %p946_p0 }
 0x1a5   : > { %p621_p5 = por %p620_p13, %p619_p6 }
 0x1a6   : > { %p617_p3 = pneg %p616_p11 }
 0x1a7   : > { %p623_p7 = por %p622_p8, %p621_p5 }
 0x1a9   : > { %p624_p4 = pnand %p623_p7, %p617_p3 }
 0x1ab   : > { %627 = shalt.err (!%p624_p4)
}
 0x1ac   : > { %466 = dma.vmem_to_hbm [thread:$0]  (%p946_p0), %s884_s18, 128, %s882_s16, %s320_s21  }
 0x1ad PF: > { %s345_s26 = sand.u32 1, %s666_s9   ;;  %p947_p10 = scmp.ne.s32.totalorder %s939_s24, 0 }
 0x1ae   : > { %p948_p12 = scmp.ge.s32.totalorder %s686_s14, 2  ;;  %s346_s3 = scalar_lea.sflag [#allocation7], %s345_s26 }
 0x1b0   : > { %p476_p1 = pnand %p948_p12, %p947_p10 }
 0x1b2   : > { %661 = dma.done.wait (!%p476_p1), %s346_s3, 128  }
 0x1b3   : > { %663 = vsyncadd (!%p476_p1), %s346_s3, 4294967168  ;;  %s21_s14 = sadd.s32 1, %s686_s14   ;;  %s949_s9 = smov %s670_s10 }
 0x1b4   : > { %p18_p2 = scmp.ge.s32.totalorder %s21_s14, 4   ;;  %s950_s10 = smov %s674_s11 }
 0x1b5   : > { %s951_s11 = smov %s763_s23  ;;  %s952_s12 = smov %s682_s13 }
 0x1b6   : > { %s953_s13 = smov %s955_s17  ;;  %20 = sbr.rel (!%p18_p2) target bundleno = 8 (0x8), region = 94 }
 0x1bd   :  { %351 = vsyncpa [#allocation6], 1 }
 0x1be   :  { %353 = vsyncpa [#allocation6 + $0x1], 1 }
 0x1bf   :  { %354 = vsyncpa [#allocation9], 1 }
 0x1c0   :  { %356 = vsyncpa [#allocation9 + $0x1], 1 }
 0x1c1   :  { %357 = vsyncpa [#allocation7], 1 }
 0x1c2   :  { %359 = vsyncpa [#allocation7 + $0x1], 1 }

</bundles_post_ra>
